<compile_context>
chip_gen: v7x
topology: tpu7x:2x2x1
jax: 0.10.0
libtpu: 0.0.40
codegen_flags: <defaults>
</compile_context>

<pallas_src>
import functools

import jax
import jax.numpy as jnp
from jax.experimental import pallas as pl
from jax.experimental.pallas import tpu as pltpu


# ----------------------------- Pallas kernel -----------------------------

def _psa_kernel(x_ref, wall_ref, w1_ref, b1_ref, lnw_ref, lnb_ref,
                w2_ref, b2_ref, o_ref, *, S, Ci):
    """Fused PSA_p forward for one batch element.

    x_ref    : [1, C, HW]        input (channels on sublanes, HW on lanes)
    wall_ref : [3*S + 8, C]      stacked 1x1 conv weights:
                 rows [0,   Ci)      -> conv_v_right
                 rows [S,   S+Ci)    -> conv_q_left
                 rows [2S,  2S+Ci)   -> conv_v_left
                 row   3S            -> conv_q_right
    w1/b1    : [Cmid, Ci] / [Cmid, 1]   conv_up[0]
    lnw/lnb  : [Cmid, 1]                LayerNorm affine
    w2/b2    : [planes, Cmid] / [planes, 1]  conv_up[3]
    o_ref    : [1, C, HW]
    """
    x = x_ref[0]                                          # [C, HW]

    # one MXU matmul for all four 1x1x1 projections (lane-dense outputs)
    proj = jnp.dot(wall_ref[...], x,
                   preferred_element_type=jnp.float32)    # [3S+8, HW]
    v_r = proj[0:Ci]                                      # [Ci, HW]
    g_l = proj[S:S + Ci]                                  # [Ci, HW]
    th_l = proj[2 * S:2 * S + Ci]                         # [Ci, HW]
    q_r = proj[3 * S:3 * S + 1]                           # [1,  HW]

    # ---- spatial_pool: per-channel mask ----
    qm = q_r - jnp.max(q_r, axis=-1, keepdims=True)
    qe = jnp.exp(qm)
    cmask = qe / jnp.sum(qe, axis=-1, keepdims=True)      # softmax over HW
    ctx = jnp.sum(v_r * cmask, axis=-1, keepdims=True)    # [Ci, 1]

    h = jnp.dot(w1_ref[...], ctx,
                preferred_element_type=jnp.float32) + b1_ref[...]   # [Cmid,1]
    mu = jnp.mean(h, axis=0, keepdims=True)               # LayerNorm over Cmid
    var = jnp.mean((h - mu) ** 2, axis=0, keepdims=True)
    hn = (h - mu) * jax.lax.rsqrt(var + 1e-5)
    hn = hn * lnw_ref[...] + lnb_ref[...]
    hr = jnp.maximum(hn, 0.0)
    up = jnp.dot(w2_ref[...], hr,
                 preferred_element_type=jnp.float32) + b2_ref[...]  # [planes,1]
    mask_ch = jax.nn.sigmoid(up)                          # [planes, 1]

    # ---- channel_pool: spatial mask ----
    avg = jnp.mean(g_l, axis=-1, keepdims=True)           # [Ci, 1]
    tm = th_l - jnp.max(th_l, axis=-1, keepdims=True)
    te = jnp.exp(tm)
    tsm = te / jnp.sum(te, axis=-1, keepdims=True)        # softmax over HW
    ctx_sp = jnp.sum(avg * tsm, axis=0, keepdims=True)    # [1, HW]
    mask_sp = jax.nn.sigmoid(ctx_sp)                      # [1, HW]

    # out = x*mask_ch + x*mask_sp  (requires planes == inplanes, as in module)
    o_ref[0] = x * (mask_ch + mask_sp)


# ----------------------------- wrapper -----------------------------

def psa_p_forward(x, params):
    """x: [B, C, H, W] float32 (NCHW, 1x1 Conv2d convention)."""
    B, C, H, W = x.shape
    Ci = params["w_v_right"].shape[0]       # inter_planes
    Cmid = params["w1"].shape[0]            # inter_planes // 2
    planes = params["w2"].shape[0]
    assert planes == C, "PSA_p forward requires planes == inplanes"
    HW = H * W

    xr = x.reshape(B, C, HW)                # free reshape, no transpose

    # stack all projection weights; each group padded to a sublane multiple
    S = max(8, ((Ci + 7) // 8) * 8)
    Wrows = 3 * S + 8
    wall = jnp.zeros((Wrows, C), jnp.float32)
    wall = wall.at[0:Ci].set(params["w_v_right"])
    wall = wall.at[S:S + Ci].set(params["w_q_left"])
    wall = wall.at[2 * S:2 * S + Ci].set(params["w_v_left"])
    wall = wall.at[3 * S:3 * S + 1].set(params["w_q_right"])

    kernel = functools.partial(_psa_kernel, S=S, Ci=Ci)

    out = pl.pallas_call(
        kernel,
        out_shape=jax.ShapeDtypeStruct((B, C, HW), jnp.float32),
        grid=(B,),
        in_specs=[
            pl.BlockSpec((1, C, HW), lambda b: (b, 0, 0)),      # x
            pl.BlockSpec((Wrows, C), lambda b: (0, 0)),         # stacked proj W
            pl.BlockSpec((Cmid, Ci), lambda b: (0, 0)),         # w1
            pl.BlockSpec((Cmid, 1), lambda b: (0, 0)),          # b1
            pl.BlockSpec((Cmid, 1), lambda b: (0, 0)),          # ln_w
            pl.BlockSpec((Cmid, 1), lambda b: (0, 0)),          # ln_b
            pl.BlockSpec((planes, Cmid), lambda b: (0, 0)),     # w2
            pl.BlockSpec((planes, 1), lambda b: (0, 0)),        # b2
        ],
        out_specs=pl.BlockSpec((1, C, HW), lambda b: (b, 0, 0)),
        compiler_params=pltpu.CompilerParams(
            dimension_semantics=("parallel",)),
    )(xr, wall,
      params["w1"], params["b1"].reshape(Cmid, 1),
      params["ln_w"].reshape(Cmid, 1), params["ln_b"].reshape(Cmid, 1),
      params["w2"], params["b2"].reshape(planes, 1))

    return out.reshape(B, C, H, W)


# ----------------------------- params & reference -----------------------------

def init_params(key, inplanes, planes):
    Ci = planes // 2
    Cmid = Ci // 2
    ks = jax.random.split(key, 8)
    std = (2.0 / inplanes) ** 0.5           # kaiming normal, fan_in
    b1b = (1.0 / Ci) ** 0.5                 # pytorch default conv init bounds
    b2b = (1.0 / Cmid) ** 0.5
    return {
        "w_q_right": jax.random.normal(ks[0], (1, inplanes), jnp.float32) * std,
        "w_v_right": jax.random.normal(ks[1], (Ci, inplanes), jnp.float32) * std,
        "w_q_left": jax.random.normal(ks[2], (Ci, inplanes), jnp.float32) * std,
        "w_v_left": jax.random.normal(ks[3], (Ci, inplanes), jnp.float32) * std,
        "w1": jax.random.uniform(ks[4], (Cmid, Ci), jnp.float32, -b1b, b1b),
        "b1": jax.random.uniform(ks[5], (Cmid,), jnp.float32, -b1b, b1b),
        "ln_w": jnp.ones((Cmid,), jnp.float32),
        "ln_b": jnp.zeros((Cmid,), jnp.float32),
        "w2": jax.random.uniform(ks[6], (planes, Cmid), jnp.float32, -b2b, b2b),
        "b2": jax.random.uniform(ks[7], (planes,), jnp.float32, -b2b, b2b),
    }


def reference_forward(x, params):
    """Plain-JAX replica of PSA_p.forward (spatial_pool + channel_pool)."""
    B, C, H, W = x.shape
    HW = H * W
    xr = x.reshape(B, C, HW)

    def conv1x1(w, z):                      # w: [O, Cin], z: [B, Cin, HW]
        return jnp.einsum("oc,bcp->bop", w, z)

    # spatial_pool
    input_x = conv1x1(params["w_v_right"], xr)                  # [B, Ci, HW]
    context_mask = conv1x1(params["w_q_right"], xr)             # [B, 1, HW]
    context_mask = jax.nn.softmax(context_mask, axis=2)
    context = jnp.einsum("bcp,bop->bco", input_x, context_mask)  # [B, Ci, 1]
    h = jnp.einsum("mc,bco->bmo", params["w1"], context) + \
        params["b1"][None, :, None]
    mu = h.mean(axis=1, keepdims=True)
    var = ((h - mu) ** 2).mean(axis=1, keepdims=True)
    hn = (h - mu) / jnp.sqrt(var + 1e-5)
    hn = hn * params["ln_w"][None, :, None] + params["ln_b"][None, :, None]
    hr = jnp.maximum(hn, 0.0)
    up = jnp.einsum("pm,bmo->bpo", params["w2"], hr) + \
        params["b2"][None, :, None]
    mask_ch = jax.nn.sigmoid(up)                                # [B, planes, 1]
    out_ch = xr * mask_ch

    # channel_pool
    g = conv1x1(params["w_q_left"], xr)                         # [B, Ci, HW]
    avg = g.mean(axis=2, keepdims=True)                         # [B, Ci, 1]
    theta = jax.nn.softmax(conv1x1(params["w_v_left"], xr), axis=2)
    ctx_sp = jnp.einsum("bco,bcp->bop", avg, theta)             # [B, 1, HW]
    mask_sp = jax.nn.sigmoid(ctx_sp)
    out_sp = xr * mask_sp

    return (out_ch + out_sp).reshape(B, C, H, W)


# ----------------------------- main -----------------------------

if __name__ == "__main__":
    B, C, H, W = 2, 8, 16, 16               # inplanes = planes = 8 -> Ci=4, Cmid=2
    key = jax.random.PRNGKey(0)
    kx, kp = jax.random.split(key)
    x = jax.random.normal(kx, (B, C, H, W), jnp.float32)
    params = init_params(kp, C, C)

    y = jax.block_until_ready(psa_p_forward(x, params))

    y_ref = reference_forward(x, params)
    assert jnp.allclose(y, y_ref, atol=1e-4, rtol=1e-4), \
        float(jnp.max(jnp.abs(y - y_ref)))

    print("KERNEL_OK")
</pallas_src>

<mosaic_0001>
module attributes {stable_mosaic.version = 11 : i64} {
  func.func @_psa_kernel(%arg0: i32, %arg1: memref<1x8x256xf32, #tpu.memory_space<vmem>>, %arg2: memref<32x8xf32, #tpu.memory_space<vmem>>, %arg3: memref<2x4xf32, #tpu.memory_space<vmem>>, %arg4: memref<2x1xf32, #tpu.memory_space<vmem>>, %arg5: memref<2x1xf32, #tpu.memory_space<vmem>>, %arg6: memref<2x1xf32, #tpu.memory_space<vmem>>, %arg7: memref<8x2xf32, #tpu.memory_space<vmem>>, %arg8: memref<8x1xf32, #tpu.memory_space<vmem>>, %arg9: memref<1x8x256xf32, #tpu.memory_space<vmem>>) attributes {dimension_semantics = [#tpu.dimension_semantics<parallel>], iteration_bounds = array<i64: 2>, scalar_prefetch = 0 : i64, scratch_operands = 0 : i64, tpu.core_type = #tpu.core_type<tc>, window_params = [{transform_indices = @transform_0, window_bounds = array<i64: 1, 8, 256>}, {pipeline_mode = #tpu.pipeline_mode<synchronous>, transform_indices = @transform_1, window_bounds = array<i64: 32, 8>}, {pipeline_mode = #tpu.pipeline_mode<synchronous>, transform_indices = @transform_2, window_bounds = array<i64: 2, 4>}, {pipeline_mode = #tpu.pipeline_mode<synchronous>, transform_indices = @transform_3, window_bounds = array<i64: 2, 1>}, {pipeline_mode = #tpu.pipeline_mode<synchronous>, transform_indices = @transform_4, window_bounds = array<i64: 2, 1>}, {pipeline_mode = #tpu.pipeline_mode<synchronous>, transform_indices = @transform_5, window_bounds = array<i64: 2, 1>}, {pipeline_mode = #tpu.pipeline_mode<synchronous>, transform_indices = @transform_6, window_bounds = array<i64: 8, 2>}, {pipeline_mode = #tpu.pipeline_mode<synchronous>, transform_indices = @transform_7, window_bounds = array<i64: 8, 1>}, {transform_indices = @transform_8, window_bounds = array<i64: 1, 8, 256>}]} {
    %c0 = arith.constant 0 : index
    %c0_0 = arith.constant 0 : index
    %c0_1 = arith.constant 0 : index
    %0 = vector.load %arg1[%c0, %c0_0, %c0_1] : memref<1x8x256xf32, #tpu.memory_space<vmem>>, vector<1x8x256xf32>
    %1 = vector.shape_cast %0 : vector<1x8x256xf32> to vector<8x256xf32>
    %c0_2 = arith.constant 0 : index
    %c0_3 = arith.constant 0 : index
    %2 = vector.load %arg2[%c0_2, %c0_3] : memref<32x8xf32, #tpu.memory_space<vmem>>, vector<32x8xf32>
    %cst = arith.constant dense<0.000000e+00> : vector<32x256xf32>
    %3 = tpu.matmul %2, %1, %cst {dimension_numbers = #tpu.dot_dimension_numbers<[1], [0], [0], [1], [0, 0, 1, 1], [], []>} : vector<32x8xf32>, vector<8x256xf32>, vector<32x256xf32> -> vector<32x256xf32>
    %4 = vector.extract_strided_slice %3 {offsets = [0, 0], sizes = [4, 256], strides = [1, 1]} : vector<32x256xf32> to vector<4x256xf32>
    %5 = vector.extract_strided_slice %3 {offsets = [8, 0], sizes = [4, 256], strides = [1, 1]} : vector<32x256xf32> to vector<4x256xf32>
    %6 = vector.extract_strided_slice %3 {offsets = [16, 0], sizes = [4, 256], strides = [1, 1]} : vector<32x256xf32> to vector<4x256xf32>
    %7 = vector.extract_strided_slice %3 {offsets = [24, 0], sizes = [1, 256], strides = [1, 1]} : vector<32x256xf32> to vector<1x256xf32>
    %cst_4 = arith.constant dense<0xFF800000> : vector<1xf32>
    %8 = vector.multi_reduction <maximumf>, %7, %cst_4 [1] : vector<1x256xf32> to vector<1xf32>
    %9 = vector.shape_cast %8 : vector<1xf32> to vector<1x1xf32>
    %10 = vector.broadcast %9 : vector<1x1xf32> to vector<1x256xf32>
    %11 = arith.subf %7, %10 : vector<1x256xf32>
    %12 = math.exp %11 : vector<1x256xf32>
    %cst_5 = arith.constant dense<0.000000e+00> : vector<1xf32>
    %13 = vector.multi_reduction <add>, %12, %cst_5 [1] : vector<1x256xf32> to vector<1xf32>
    %14 = vector.shape_cast %13 : vector<1xf32> to vector<1x1xf32>
    %15 = vector.broadcast %14 : vector<1x1xf32> to vector<1x256xf32>
    %16 = arith.divf %12, %15 : vector<1x256xf32>
    %17 = vector.broadcast %16 : vector<1x256xf32> to vector<4x256xf32>
    %18 = arith.mulf %4, %17 : vector<4x256xf32>
    %cst_6 = arith.constant dense<0.000000e+00> : vector<4xf32>
    %19 = vector.multi_reduction <add>, %18, %cst_6 [1] : vector<4x256xf32> to vector<4xf32>
    %20 = vector.shape_cast %19 : vector<4xf32> to vector<4x1xf32>
    %c0_7 = arith.constant 0 : index
    %c0_8 = arith.constant 0 : index
    %21 = vector.load %arg3[%c0_7, %c0_8] : memref<2x4xf32, #tpu.memory_space<vmem>>, vector<2x4xf32>
    %cst_9 = arith.constant dense<0.000000e+00> : vector<2x1xf32>
    %22 = tpu.matmul %21, %20, %cst_9 {dimension_numbers = #tpu.dot_dimension_numbers<[1], [0], [0], [1], [0, 0, 1, 1], [], []>} : vector<2x4xf32>, vector<4x1xf32>, vector<2x1xf32> -> vector<2x1xf32>
    %c0_10 = arith.constant 0 : index
    %c0_11 = arith.constant 0 : index
    %23 = vector.load %arg4[%c0_10, %c0_11] : memref<2x1xf32, #tpu.memory_space<vmem>>, vector<2x1xf32>
    %24 = arith.addf %22, %23 : vector<2x1xf32>
    %cst_12 = arith.constant dense<0.000000e+00> : vector<1xf32>
    %25 = vector.multi_reduction <add>, %24, %cst_12 [0] : vector<2x1xf32> to vector<1xf32>
    %26 = vector.shape_cast %25 : vector<1xf32> to vector<1x1xf32>
    %cst_13 = arith.constant 2.000000e+00 : f32
    %27 = vector.broadcast %cst_13 : f32 to vector<1x1xf32>
    %28 = arith.divf %26, %27 : vector<1x1xf32>
    %29 = vector.broadcast %28 : vector<1x1xf32> to vector<2x1xf32>
    %30 = arith.subf %24, %29 : vector<2x1xf32>
    %31 = arith.mulf %30, %30 : vector<2x1xf32>
    %cst_14 = arith.constant dense<0.000000e+00> : vector<1xf32>
    %32 = vector.multi_reduction <add>, %31, %cst_14 [0] : vector<2x1xf32> to vector<1xf32>
    %33 = vector.shape_cast %32 : vector<1xf32> to vector<1x1xf32>
    %cst_15 = arith.constant 2.000000e+00 : f32
    %34 = vector.broadcast %cst_15 : f32 to vector<1x1xf32>
    %35 = arith.divf %33, %34 : vector<1x1xf32>
    %36 = vector.broadcast %28 : vector<1x1xf32> to vector<2x1xf32>
    %37 = arith.subf %24, %36 : vector<2x1xf32>
    %cst_16 = arith.constant 9.99999974E-6 : f32
    %38 = vector.broadcast %cst_16 : f32 to vector<1x1xf32>
    %39 = arith.addf %35, %38 : vector<1x1xf32>
    %40 = math.rsqrt %39 : vector<1x1xf32>
    %41 = vector.broadcast %40 : vector<1x1xf32> to vector<2x1xf32>
    %42 = arith.mulf %37, %41 : vector<2x1xf32>
    %c0_17 = arith.constant 0 : index
    %c0_18 = arith.constant 0 : index
    %43 = vector.load %arg5[%c0_17, %c0_18] : memref<2x1xf32, #tpu.memory_space<vmem>>, vector<2x1xf32>
    %44 = arith.mulf %42, %43 : vector<2x1xf32>
    %c0_19 = arith.constant 0 : index
    %c0_20 = arith.constant 0 : index
    %45 = vector.load %arg6[%c0_19, %c0_20] : memref<2x1xf32, #tpu.memory_space<vmem>>, vector<2x1xf32>
    %46 = arith.addf %44, %45 : vector<2x1xf32>
    %cst_21 = arith.constant 0.000000e+00 : f32
    %47 = vector.broadcast %cst_21 : f32 to vector<2x1xf32>
    %48 = arith.maximumf %46, %47 : vector<2x1xf32>
    %c0_22 = arith.constant 0 : index
    %c0_23 = arith.constant 0 : index
    %49 = vector.load %arg7[%c0_22, %c0_23] : memref<8x2xf32, #tpu.memory_space<vmem>>, vector<8x2xf32>
    %cst_24 = arith.constant dense<0.000000e+00> : vector<8x1xf32>
    %50 = tpu.matmul %49, %48, %cst_24 {dimension_numbers = #tpu.dot_dimension_numbers<[1], [0], [0], [1], [0, 0, 1, 1], [], []>} : vector<8x2xf32>, vector<2x1xf32>, vector<8x1xf32> -> vector<8x1xf32>
    %c0_25 = arith.constant 0 : index
    %c0_26 = arith.constant 0 : index
    %51 = vector.load %arg8[%c0_25, %c0_26] : memref<8x1xf32, #tpu.memory_space<vmem>>, vector<8x1xf32>
    %52 = arith.addf %50, %51 : vector<8x1xf32>
    %53 = arith.negf %52 : vector<8x1xf32>
    %54 = math.exp %53 : vector<8x1xf32>
    %cst_27 = arith.constant 1.000000e+00 : f32
    %55 = vector.broadcast %cst_27 : f32 to vector<8x1xf32>
    %56 = arith.addf %55, %54 : vector<8x1xf32>
    %57 = arith.divf %55, %56 : vector<8x1xf32>
    %cst_28 = arith.constant dense<0.000000e+00> : vector<4xf32>
    %58 = vector.multi_reduction <add>, %5, %cst_28 [1] : vector<4x256xf32> to vector<4xf32>
    %59 = vector.shape_cast %58 : vector<4xf32> to vector<4x1xf32>
    %cst_29 = arith.constant 2.560000e+02 : f32
    %60 = vector.broadcast %cst_29 : f32 to vector<4x1xf32>
    %61 = arith.divf %59, %60 : vector<4x1xf32>
    %cst_30 = arith.constant dense<0xFF800000> : vector<4xf32>
    %62 = vector.multi_reduction <maximumf>, %6, %cst_30 [1] : vector<4x256xf32> to vector<4xf32>
    %63 = vector.shape_cast %62 : vector<4xf32> to vector<4x1xf32>
    %64 = vector.broadcast %63 : vector<4x1xf32> to vector<4x256xf32>
    %65 = arith.subf %6, %64 : vector<4x256xf32>
    %66 = math.exp %65 : vector<4x256xf32>
    %cst_31 = arith.constant dense<0.000000e+00> : vector<4xf32>
    %67 = vector.multi_reduction <add>, %66, %cst_31 [1] : vector<4x256xf32> to vector<4xf32>
    %68 = vector.shape_cast %67 : vector<4xf32> to vector<4x1xf32>
    %69 = vector.broadcast %68 : vector<4x1xf32> to vector<4x256xf32>
    %70 = arith.divf %66, %69 : vector<4x256xf32>
    %71 = vector.broadcast %61 : vector<4x1xf32> to vector<4x256xf32>
    %72 = arith.mulf %71, %70 : vector<4x256xf32>
    %cst_32 = arith.constant dense<0.000000e+00> : vector<256xf32>
    %73 = vector.multi_reduction <add>, %72, %cst_32 [0] : vector<4x256xf32> to vector<256xf32>
    %74 = vector.shape_cast %73 : vector<256xf32> to vector<1x256xf32>
    %75 = arith.negf %74 : vector<1x256xf32>
    %76 = math.exp %75 : vector<1x256xf32>
    %cst_33 = arith.constant 1.000000e+00 : f32
    %77 = vector.broadcast %cst_33 : f32 to vector<1x256xf32>
    %78 = arith.addf %77, %76 : vector<1x256xf32>
    %79 = arith.divf %77, %78 : vector<1x256xf32>
    %80 = vector.broadcast %57 : vector<8x1xf32> to vector<8x256xf32>
    %81 = vector.broadcast %79 : vector<1x256xf32> to vector<8x256xf32>
    %82 = arith.addf %80, %81 : vector<8x256xf32>
    %83 = arith.mulf %1, %82 : vector<8x256xf32>
    %c0_34 = arith.constant 0 : index
    %c0_35 = arith.constant 0 : index
    %c0_36 = arith.constant 0 : index
    %84 = vector.load %arg9[%c0_34, %c0_35, %c0_36] : memref<1x8x256xf32, #tpu.memory_space<vmem>>, vector<1x8x256xf32>
    %85 = vector.shape_cast %84 : vector<1x8x256xf32> to vector<8x256xf32>
    %86 = vector.shape_cast %83 : vector<8x256xf32> to vector<1x8x256xf32>
    tpu.vector_store %arg9[%c0_34, %c0_35, %c0_36], %86 {strides = array<i32>} : memref<1x8x256xf32, #tpu.memory_space<vmem>>, vector<1x8x256xf32>,
    return
  }
  func.func @transform_0(%arg0: i32) -> (i32, i32, i32) {
    %c0_i32 = arith.constant 0 : i32
    %c0_i32_0 = arith.constant 0 : i32
    %c0_i32_1 = arith.constant 0 : i32
    return %arg0, %c0_i32, %c0_i32_0 : i32, i32, i32
  }
  func.func @transform_1(%arg0: i32) -> (i32, i32) {
    %c0_i32 = arith.constant 0 : i32
    %c0_i32_0 = arith.constant 0 : i32
    %c0_i32_1 = arith.constant 0 : i32
    return %c0_i32, %c0_i32_0 : i32, i32
  }
  func.func @transform_2(%arg0: i32) -> (i32, i32) {
    %c0_i32 = arith.constant 0 : i32
    %c0_i32_0 = arith.constant 0 : i32
    %c0_i32_1 = arith.constant 0 : i32
    return %c0_i32, %c0_i32_0 : i32, i32
  }
  func.func @transform_3(%arg0: i32) -> (i32, i32) {
    %c0_i32 = arith.constant 0 : i32
    %c0_i32_0 = arith.constant 0 : i32
    %c0_i32_1 = arith.constant 0 : i32
    return %c0_i32, %c0_i32_0 : i32, i32
  }
  func.func @transform_4(%arg0: i32) -> (i32, i32) {
    %c0_i32 = arith.constant 0 : i32
    %c0_i32_0 = arith.constant 0 : i32
    %c0_i32_1 = arith.constant 0 : i32
    return %c0_i32, %c0_i32_0 : i32, i32
  }
  func.func @transform_5(%arg0: i32) -> (i32, i32) {
    %c0_i32 = arith.constant 0 : i32
    %c0_i32_0 = arith.constant 0 : i32
    %c0_i32_1 = arith.constant 0 : i32
    return %c0_i32, %c0_i32_0 : i32, i32
  }
  func.func @transform_6(%arg0: i32) -> (i32, i32) {
    %c0_i32 = arith.constant 0 : i32
    %c0_i32_0 = arith.constant 0 : i32
    %c0_i32_1 = arith.constant 0 : i32
    return %c0_i32, %c0_i32_0 : i32, i32
  }
  func.func @transform_7(%arg0: i32) -> (i32, i32) {
    %c0_i32 = arith.constant 0 : i32
    %c0_i32_0 = arith.constant 0 : i32
    %c0_i32_1 = arith.constant 0 : i32
    return %c0_i32, %c0_i32_0 : i32, i32
  }
  func.func @transform_8(%arg0: i32) -> (i32, i32, i32) {
    %c0_i32 = arith.constant 0 : i32
    %c0_i32_0 = arith.constant 0 : i32
    %c0_i32_1 = arith.constant 0 : i32
    return %arg0, %c0_i32, %c0_i32_0 : i32, i32, i32
  }
}

</mosaic_0001>

<bundles_post_ra>
// kernel: tpu_custom_call.1
= control target key start
LH: loop header
LB: loop body
LE: loop exit
PB: predicated region body
PF: predicated region fallthrough
CT: control target
= control target key end

     0   :  { %13 = vsyncpa [#allocation3], 0  ;;  %s1170_s0 = inlined_call_operand.vmem [shape: f32[2,8,256], index: 0, kind: input, shape index: {}]   ;;  %s1171_s1 = inlined_call_operand.vmem [shape: f32[32,8], index: 1, kind: input, shape index: {}]   ;;  %s1172_s2 = inlined_call_operand.vmem [shape: f32[2,4], index: 2, kind: input, shape index: {}]   ;;  %s1173_s3 = inlined_call_operand.vmem [shape: f32[2,1], index: 3, kind: input, shape index: {}]   ;;  %s1174_s4 = inlined_call_operand.vmem [shape: f32[2,1], index: 4, kind: input, shape index: {}]   ;;  %s1175_s5 = inlined_call_operand.vmem [shape: f32[2,1], index: 5, kind: input, shape index: {}]   ;;  %s1176_s6 = inlined_call_operand.vmem [shape: f32[8,2], index: 6, kind: input, shape index: {}]   ;;  %s1177_s7 = inlined_call_operand.vmem [shape: f32[8,1], index: 7, kind: input, shape index: {}]   ;;  %s1178_s8 = inlined_call_operand.hbm [shape: f32[2,8,256], index: 8, kind: output, shape index: {}]  }
   0x1   :  { %15 = vsyncpa [#allocation3 + $0x1], 0  ;;  %s1003_s27 = smov 0   ;;  %s1005_s28 = smov 0  }
   0x2   :  { %s1007_s29 = smov 0   ;;  %s1009_s30 = smov 0  }
   0x3 LB: > { %s1024_s9 = sadd.s32 4294967295, %s952_s30   ;;  %s780_s10 = sadd.s32 4294967294, %s952_s30   ;;  %s952_s30 = sphi %s1009_s30, %s1184_s30   ;;  %s948_s29 = sphi %s1007_s29, %s1183_s29   ;;  %s944_s28 = sphi %s1005_s28, %s1182_s28   ;;  %s940_s27 = sphi %s1003_s27, %s1181_s27  }
   0x4   : > { %s1028_s11 = sadd.s32 1, %s952_s30   ;;  %s201_s12 = sadd.s32 1, %s948_s29 }
   0x5   : > { %s198_s13 = ssub.s32 %s952_s30, %s1028_s11  ;;  %p211_p0 = scmp.ne.s32.totalorder %s948_s29, %s944_s28 }
   0x6   : > { %p199_p1 = scmp.eq.s32.totalorder %s198_s13, 0  ;;  %p212_p2 = scmp.eq.s32.totalorder %s1024_s9, 1 }
   0x7   : > { %p217_p3 = scmp.ne.s32.totalorder %s944_s28, %s940_s27  ;;  %p218_p4 = scmp.eq.s32.totalorder %s780_s10, 1 }
   0x8   : > { %s1039_s14 = scalar_select %p199_p1, %s948_s29, %s201_s12  }
   0x9   : > { %p1041_p5 = por %p212_p2, %p211_p0  ;;  %p1045_p6 = por %p218_p4, %p217_p3 }
   0xa   : > { %p783_p7 = scmp.ge.s32.totalorder %s952_s30, 1  ;;  %p265_p8 = scmp.lt.s32.totalorder %s952_s30, 3 }
   0xc   : > { %p266_p9 = pnand %p783_p7, %p265_p8 }
   0xd   : > { %p299_p10 = scmp.lt.s32.totalorder (!%p266_p9), %s1024_s9, 1  ;;  %v954_v0 = vmov (!%p266_p9), 0.0   ;;  %v309_v3 = vld [vmem:[%s1171_s1 + $0x18] sm:$0xff] (!%p266_p9)  ;;  %vm310_vm0 = vcmask (!%p266_p9), 64512   ;;  %v306_v4 = vld [vmem:[%s1171_s1] sm:$0xff] (!%p266_p9)  ;;  %vm412_vm1 = vcmask (!%p266_p9), 1040384   ;;  %v432_v32 = vlaneseq (!%p266_p9) }
   0xe   : > { %269 = sbr.rel (%p266_p9) target bundleno = 1366 (0x556), region = 52  ;;  %405 = vmatprep.mubr.f32.mxu1 (!%p266_p9), %v954_v0  ;;  %387 = vmatprep.mubr.f32.mxu0 (!%p266_p9), %v954_v0  ;;  %v307_v10 = vld [vmem:[%s1171_s1 + $0x8] sm:$0xff] (!%p266_p9)  ;;  %v308_v11 = vld [vmem:[%s1171_s1 + $0x10] sm:$0xff] (!%p266_p9)  ;;  %vm442_vm2 = vcmask (!%p266_p9), 1043456   ;;  %vm955_vm3 = vmmov (!%p266_p9), 0   ;;  %vm450_vm4 = vcmask (!%p266_p9), 31744  }
   0xf   : > { %v433_v33 = vshrl.u32 (!%p266_p9), %v432_v32, 7  ;;  %v448_v48 = vld [vmem:[%s1172_s2] sm:$0x3] (!%p266_p9)  ;;  %vm527_vm5 = vcmask (!%p266_p9), 1024   ;;  %vm561_vm6 = vcmask (!%p266_p9), 1041408   ;;  %vm557_vm7 = vcmask (!%p266_p9), 15360  }
  0x10   : > { %v449_v60 = vld [vmem:[%s1173_s3] sm:$0x3] (!%p266_p9)  ;;  %s296_s13 = sand.u32 (!%p266_p9), 1, %s944_s28   ;;  %s957_s25 = smov (!%p266_p9), [#allocation2]  }
  0x11   : > { %v434_v34 = vsub.s32 (!%p266_p9), 0, %v433_v33  ;;  %s894_s26 = sshll.u32 (!%p266_p9), %s957_s25, 4  ;;  %s895_s26 = int_to_ptr.vmem [resolvable:$false] %s894_s26 }
  0x12   : > { %s896_s10 = scalar_lea.vmem (!%p266_p9), %s895_s26, 512 }
  0x15   : > { %s300_s17 = scalar_select %p299_p10, %s1024_s9, 1 }
  0x17   : > { %s803_s18 = sshll.u32 %s300_s17, 4  ;;  %s784_s17 = sshll.u32 %s296_s13, 4 }
  0x18   : > { %s303_s21 = scalar_lea.vmem %s1170_s0, %s803_s18  ;;  %s804_s18 = sshll.u32 %s1024_s9, 8 }
  0x19   : > { %v1058_v1 = vld [vmem:[%s303_s21 + $0x8] sm:$0xff]  ;;  %v1060_v2 = vld [vmem:[%s303_s21] sm:$0xff]  ;;  %s298_s19 = scalar_lea.vmem [#allocation2], %s784_s17  ;;  %s1128_s23 = scalar_lea.hbm %s1178_s8, %s804_s18 }
  0x1a   : > { %819 = vmatprep.subr.mxu1 %v1058_v1  ;;  %323 = vmatprep.subr.mxu0 %v1058_v1  ;;  %s721_s20 = sshll.u32 %s298_s19, 4  ;;  %s707_s9 = scalar_lea.sflag [#allocation3], %s296_s13  ;;  %s1130_s20 = int_to_ptr.vmem [resolvable:$true] %s721_s20 }
  0x1b   : > { %820 = vmatpush1.msra.mxu1 %v1060_v2  ;;  %324 = vmatpush1.msra.mxu0 %v1060_v2  ;;  %s890_s24 = scalar_lea.vmem %s1130_s20, 256  ;;  %p897_p0 = scmp.lt.s32.totalorder %s1130_s20, %s895_s26 }
  0x1c   : > { %790 = vmatmul.mubr.msk.f32.vlgmr.msra.gmra.mrb[0].mxu1 %vm310_vm0, %v309_v3  ;;  %809 = vmatprep.subr.mxu1 %v954_v0  ;;  %p891_p11 = scmp.ne.s32.totalorder %s1130_s20, %s890_s24  ;;  %p898_p1 = scmp.lt.s32.totalorder %s896_s10, %s890_s24 }
  0x1d   : > { %787 = vmatmul.mubr.msk.f32.vlgmr.msra.gmra.mrb[0].mxu0 %vm310_vm0, %v306_v4  ;;  %811 = vmatprep.mubr.msk.f32.mxu1 %vm955_vm3, %v954_v0 }
  0x1e   : > { %393 = vmatprep.mubr.f32.mxu0 %v954_v0  ;;  %p892_p12 = pnand %p891_p11, %p1041_p5  ;;  %p899_p2 = por %p898_p1, %p897_p0 }
  0x20   : > { %p893_p13 = pneg %p892_p12 }
  0x21   : > { %788 = vmatmul.mubr.msk.f32.gmra.mrb[2].mxu0 %vm310_vm0, %v307_v10 }
  0x22   : > { %399 = vmatprep.mubr.f32.mxu0 %v954_v0  ;;  %p900_p3 = pnand %p899_p2, %p893_p13 }
  0x25   : > { %789 = vmatmul.mubr.msk.f32.gmra.mrb[4].mxu0 %vm310_vm0, %v308_v11 }
  0xef   : > { %v407_v5 = vpop.f32.mrb[0].mxu1 }
  0xf0   : > { %v409_v6 = vpop.f32.mrb[1].mxu1  ;;  %v413_v7 = vsel %vm412_vm1, %v407_v5, -inf  ;;  %v389_v22 = vpop.f32.mrb[0].mxu0 }
  0xf1   : > { %v414_v8 = vsel %vm412_vm1, %v409_v6, -inf  ;;  %v391_v23 = vpop.f32.mrb[1].mxu0 }
  0xf2   : > { %v415_v9 = vmax.f32 %v413_v7, %v414_v8 }
  0xf4   : > { %416 = vmax.xlane.f32.xlu0 %v415_v9  ;;  %v395_v24 = vpop.f32.mrb[2].mxu0 }
  0xf5   : > { %v397_v25 = vpop.f32.mrb[3].mxu0  ;;  %v641_v45 = vsel %vm442_vm2, %v395_v24, 0.0  ;;  %v552_v24 = vld [vmem:[%s1175_s5] sm:$0x3] }
  0xf6   : > { %v642_v46 = vsel %vm442_vm2, %v397_v25, 0.0 }
  0xf7   : > { %v643_v47 = vadd.f32 %v642_v46, %v641_v45 }
  0xf8   : > { %v401_v26 = vpop.f32.mrb[4].mxu0 }
  0xf9   : > { %v648_v27 = vsel %vm442_vm2, %v401_v26, -inf  ;;  %v403_v28 = vpop.f32.mrb[5].mxu0 }
  0xfa   : > { %v649_v29 = vsel %vm442_vm2, %v403_v28, -inf }
  0xfb   : > { %v650_v30 = vmax.f32 %v648_v27, %v649_v29  ;;  %v956_v29 = vmov 0  }
  0xfc   : > { %863 = vset.pattern.permute.xlu0 %v956_v29 }
 0x181   : > { %v417_v12 = vpop.xlane.xlu0 %416 }
 0x182   : > { %v418_v13 = vsub.f32 %v407_v5, %v417_v12  ;;  %v419_v14 = vsub.f32 %v409_v6, %v417_v12 }
 0x184   : > { %v420_v15 = vmul.f32 1.442695, %v418_v13  ;;  %v422_v16 = vmul.f32 1.442695, %v419_v14 }
 0x186   : > { %864 = vpow2.f32 %v420_v15 }
 0x187   : > { %866 = vpow2.f32 %v422_v16 }
 0x190   : > { %v865_v17 = vpop.eup %864 }
 0x191   : > { %v867_v18 = vpop.eup %866  ;;  %v424_v19 = vsel %vm412_vm1, %v865_v17, 0.0 }
 0x192   : > { %v425_v20 = vsel %vm412_vm1, %v867_v18, 0.0 }
 0x193   : > { %v426_v21 = vadd.f32 %v425_v20, %v424_v19 }
 0x195   : > { %427 = vadd.xlane.f32.xlu0 %v426_v21 }
 0x222   : > { %v428_v31 = vpop.xlane.xlu0 %427 }
 0x223   : > { %868 = vrcp.f32 %v428_v31 }
 0x22d   : > { %v869_v35 = vpop.eup %868 }
 0x22e   : > { %v430_v36 = vmul.f32 %v869_v35, %v865_v17  ;;  %v431_v37 = vmul.f32 %v869_v35, %v867_v18 }
 0x230   : > { %v435_v38 = vrot.slane %v430_v36, %v434_v34  ;;  %v439_v39 = vrot.slane %v431_v37, %v434_v34 }
 0x232   : > { %v440_v40 = vmul.f32 %v435_v38, %v389_v22  ;;  %v441_v41 = vmul.f32 %v439_v39, %v391_v23  ;;  %v550_v22 = vld [vmem:[%s1174_s4] sm:$0x3] }
 0x234   : > { %v443_v42 = vsel %vm442_vm2, %v440_v40, 0.0  ;;  %v444_v43 = vsel %vm442_vm2, %v441_v41, 0.0 }
 0x235   : > { %v445_v44 = vadd.f32 %v444_v43, %v443_v42 }
 0x237   : > { %446 = vadd.xlane.f32.xlu1 %v445_v44 }
 0x23b   : > { %651 = vmax.xlane.f32.xlu1 %v650_v30  ;;  %v556_v30 = vld [vmem:[%s1177_s7] sm:$0xff] }
 0x23f   : > { %644 = vadd.xlane.f32.xlu1 %v643_v47 }
 0x2c4   : > { %v447_v49 = vpop.xlane.xlu1 %446 }
 0x2c5   : > { %810 = vmatpush3.msk.msra.mxu1 %vm442_vm2, %v447_v49 }
 0x2c6   : > { %812 = vmatmul.mubr.msk.f32.vlgmr.msra.gmra.mrb[2].mxu1 %vm450_vm4, %v448_v48  ;;  %814 = vmatprep.subr.mxu1 %v954_v0 }
 0x2c7   : > { %816 = vmatprep.mubr.msk.f32.mxu1 %vm955_vm3, %v954_v0 }
 0x2c8   : > { %v652_v50 = vpop.xlane.xlu1 %651 }
 0x2c9   : > { %v653_v51 = vsub.f32 %v401_v26, %v652_v50  ;;  %v654_v52 = vsub.f32 %v403_v28, %v652_v50  ;;  %v555_v28 = vld [vmem:[%s1176_s6] sm:$0xff] }
 0x2cb   : > { %v655_v53 = vmul.f32 1.442695, %v653_v51  ;;  %v657_v54 = vmul.f32 1.442695, %v654_v52 }
 0x2cc   : > { %v645_v40 = vpop.xlane.xlu1 %644 }
 0x2cd   : > { %870 = vpow2.f32 %v655_v53  ;;  %v647_v42 = vmul.f32 0.00390625, %v645_v40 }
 0x2ce   : > { %872 = vpow2.f32 %v657_v54 }
 0x2d7   : > { %v871_v55 = vpop.eup %870 }
 0x2d8   : > { %v873_v56 = vpop.eup %872  ;;  %v659_v57 = vsel %vm442_vm2, %v871_v55, 0.0 }
 0x2d9   : > { %v660_v58 = vsel %vm442_vm2, %v873_v56, 0.0 }
 0x2da   : > { %v661_v59 = vadd.f32 %v660_v58, %v659_v57 }
 0x2dc   : > { %662 = vadd.xlane.f32.xlu0 %v661_v59 }
 0x369   : > { %v663_v38 = vpop.xlane.xlu0 %662 }
 0x399   : > { %v523_v61 = vpop.f32.mrb[2].mxu1 }
 0x39a   : > { %v524_v62 = vadd.f32 %v523_v61, %v449_v60  ;;  %v813_v63 = vpop.f32.mrb[3].mxu1 }
 0x39c   : > { %v528_v0 = vsel %vm527_vm5, %v524_v62, 0.0 }
 0x39d   : > { %v529_v3 = vrot.slane %v528_v0, 4 }
 0x39f   : > { %v530_v4 = vadd.f32 %v529_v3, %v528_v0 }
 0x3a1   : > { %v531_v5 = vrot.slane %v530_v4, 2 }
 0x3a3   : > { %v532_v6 = vadd.f32 %v531_v5, %v530_v4 }
 0x3a5   : > { %v533_v7 = vrot.slane %v532_v6, 1 }
 0x3a7   : > { %v534_v8 = vadd.f32 %v533_v7, %v532_v6 }
 0x3a9   : > { %v536_v9 = vmul.f32 0.5, %v534_v8 }
 0x3ab   : > { %v537_v10 = vsub.f32 %v524_v62, %v536_v9 }
 0x3ad   : > { %v538_v11 = vmul.f32 %v537_v10, %v537_v10 }
 0x3af   : > { %v539_v12 = vsel %vm527_vm5, %v538_v11, 0.0 }
 0x3b0   : > { %v540_v13 = vrot.slane %v539_v12, 4 }
 0x3b2   : > { %v541_v14 = vadd.f32 %v540_v13, %v539_v12 }
 0x3b4   : > { %v542_v15 = vrot.slane %v541_v14, 2 }
 0x3b6   : > { %v543_v16 = vadd.f32 %v542_v15, %v541_v14 }
 0x3b8   : > { %v544_v17 = vrot.slane %v543_v16, 1 }
 0x3ba   : > { %v545_v18 = vadd.f32 %v544_v17, %v543_v16 }
 0x3bc   : > { %v546_v19 = vmul.f32 0.5, %v545_v18 }
 0x3be   : > { %v547_v20 = vadd.f32 1e-05, %v546_v19 }
 0x3c0   : > { %874 = vrsqrt.f32 %v547_v20 }
 0x3ca   : > { %v875_v21 = vpop.eup %874 }
 0x3cb   : > { %v549_v23 = vmul.f32 %v875_v21, %v537_v10 }
 0x3cd   : > { %v551_v25 = vmul.f32 %v550_v22, %v549_v23 }
 0x3cf   : > { %v553_v26 = vadd.f32 %v552_v24, %v551_v25 }
 0x3d1   : > { %v554_v27 = vmax.f32 %v553_v26, 0.0 }
 0x3d3   : > { %815 = vmatpush3.msk.msra.mxu1 %vm561_vm6, %v554_v27 }
 0x3d4   : > { %817 = vmatmul.mubr.msk.f32.vlgmr.msra.gmra.mrb[4].mxu1 %vm557_vm7, %v555_v28 }
 0x4a7   : > { %v631_v31 = vpop.f32.mrb[4].mxu1 }
 0x4a8   : > { %v632_v32 = vadd.f32 %v631_v31, %v556_v30  ;;  %v818_v33 = vpop.f32.mrb[5].mxu1 }
 0x4aa   : > { %v795_v34 = vmul.f32 -1.442695, %v632_v32 }
 0x4ac   : > { %876 = vpow2.f32 %v795_v34 }
 0x4b6   : > { %v877_v35 = vpop.eup %876 }
 0x4b7   : > { %v638_v36 = vadd.f32 1.0, %v877_v35 }
 0x4b9   : > { %878 = vrcp.f32 %v638_v36 }
 0x4ba   : > { %880 = vrcp.f32 %v663_v38 }
 0x4c3   : > { %v879_v37 = vpop.eup %878 }
 0x4c4   : > { %697 = vperm.xlu0 %863, %v879_v37   ;;  %v881_v39 = vpop.eup %880 }
 0x4c5   : > { %v665_v41 = vmul.f32 %v881_v39, %v871_v55  ;;  %v666_v43 = vmul.f32 %v881_v39, %v873_v56 }
 0x4c7   : > { %v667_v44 = vmul.f32 %v665_v41, %v647_v42  ;;  %v668_v45 = vmul.f32 %v666_v43, %v647_v42 }
 0x4c9   : > { %v669_v46 = vsel %vm442_vm2, %v667_v44, 0.0  ;;  %v676_v47 = vsel %vm442_vm2, %v668_v45, 0.0 }
 0x4ca   : > { %v670_v48 = vrot.slane %v669_v46, 4  ;;  %v677_v49 = vrot.slane %v676_v47, 4 }
 0x4cc   : > { %v671_v50 = vadd.f32 %v670_v48, %v669_v46  ;;  %v678_v51 = vadd.f32 %v677_v49, %v676_v47 }
 0x4ce   : > { %v672_v52 = vrot.slane %v671_v50, 2  ;;  %v679_v53 = vrot.slane %v678_v51, 2 }
 0x4d0   : > { %v673_v54 = vadd.f32 %v672_v52, %v671_v50  ;;  %v680_v57 = vadd.f32 %v679_v53, %v678_v51 }
 0x4d2   : > { %v674_v58 = vrot.slane %v673_v54, 1  ;;  %v681_v59 = vrot.slane %v680_v57, 1 }
 0x4d4   : > { %v675_v55 = vadd.f32 %v674_v58, %v673_v54  ;;  %v682_v60 = vadd.f32 %v681_v59, %v680_v57 }
 0x4d6   : > { %v796_v56 = vmul.f32 -1.442695, %v675_v55  ;;  %v797_v61 = vmul.f32 -1.442695, %v682_v60 }
 0x4d8   : > { %882 = vpow2.f32 %v796_v56 }
 0x4d9   : > { %884 = vpow2.f32 %v797_v61 }
 0x4e2   : > { %v883_v62 = vpop.eup %882 }
 0x4e3   : > { %v885_v63 = vpop.eup %884  ;;  %v689_v0 = vadd.f32 1.0, %v883_v62 }
 0x4e4   : > { %v690_v3 = vadd.f32 1.0, %v885_v63 }
 0x4e5   : > { %886 = vrcp.f32 %v689_v0 }
 0x4e6   : > { %888 = vrcp.f32 %v690_v3 }
 0x4ef   : > { %v887_v4 = vpop.eup %886 }
 0x4f0   : > { %v889_v5 = vpop.eup %888 }
 0x543   : > { %v698_v6 = vpop.permute.xlu0 %697 }
 0x544   : > { %v700_v7 = vadd.f32 %v887_v4, %v698_v6  ;;  %v701_v8 = vadd.f32 %v889_v5, %v698_v6 }
 0x546   : > { %v702_v9 = vmul.f32 %v700_v7, %v1060_v2  ;;  %v703_v10 = vmul.f32 %v701_v8, %v1058_v1 }
 0x548   : > { %704 = vst [vmem:[%s298_s19] sm:$0xff] %v702_v9  ;;  %705 = vst [vmem:[%s298_s19 + $0x8] sm:$0xff] %v703_v10 }
 0x549   : > { %903 = shalt.err (!%p900_p3)
}
 0x54a   : > { %s904_s12 = scalar_lea.hbm %s1128_s23, 256  ;;  %s908_s18 = scalar_lea.hbm %s1178_s8, 512 }
 0x54b   : > { %p905_p4 = scmp.ne.s32.totalorder %s1128_s23, %s904_s12  ;;  %p909_p9 = scmp.lt.u32.totalorder %s1128_s23, %s1178_s8 }
 0x54c   : > { %p910_p10 = scmp.lt.u32.totalorder %s908_s18, %s904_s12  ;;  %p912_p12 = scmp.lt.u32.totalorder %s904_s12, %s1128_s23 }
 0x54d   : > { %p906_p7 = pnand %p905_p4, %p1041_p5 }
 0x54e   : > { %p911_p11 = por %p910_p10, %p909_p9 }
 0x54f   : > { %p907_p8 = pneg %p906_p7 }
 0x550   : > { %p913_p13 = por %p912_p12, %p911_p11 }
 0x552   : > { %p914_p0 = pnand %p913_p13, %p907_p8 }
 0x554   : > { %917 = shalt.err (!%p914_p0)
}
 0x555   : > { %821 = dma.vmem_to_hbm [thread:$0]  (%p1041_p5), %s1130_s20, 256, %s1128_s23, %s707_s9  }
 0x556 PF: > { %p827_p1 = scmp.ge.s32.totalorder %s952_s30, 2  ;;  %s733_s22 = sand.u32 1, %s940_s27  }
 0x557   : > { %s734_s24 = scalar_lea.sflag [#allocation3], %s733_s22 }
 0x558   : > { %p824_p2 = pnand %p827_p1, %p1045_p6 }
 0x55a   : > { %935 = dma.done.wait (!%p824_p2), %s734_s24, 256  }
 0x55b   : > { %937 = vsyncadd (!%p824_p2), %s734_s24, 4294967040  ;;  %p18_p3 = scmp.ge.s32.totalorder %s1028_s11, 4   ;;  %s1181_s27 = smov %s944_s28 }
 0x55c   : > { %s1182_s28 = smov %s948_s29  ;;  %s1183_s29 = smov %s1039_s14 }
 0x55d   : > { %s1184_s30 = smov %s1028_s11  ;;  %20 = sbr.rel (!%p18_p3) target bundleno = 3 (0x3), region = 87 }
 0x564   :  { %739 = vsyncpa [#allocation3], 1 }
 0x565   :  { %741 = vsyncpa [#allocation3 + $0x1], 1 }

</bundles_post_ra>
